<compile_context>
chip_gen: v7x
topology: tpu7x:2x2x1
jax: 0.10.0
libtpu: 0.0.40
codegen_flags: <defaults>
</compile_context>

<pallas_src>
import functools
from typing import NamedTuple

import numpy as np
import jax
import jax.numpy as jnp
from jax.experimental import pallas as pl
from jax.experimental.pallas import tpu as pltpu


def _round_up(v, m):
    return ((v + m - 1) // m) * m


def _vmem_capacity_bytes(default=64 << 20):
    # 64 MiB default = smallest per-TC VMEM among v5e/v6e/v7x (v7x).
    try:
        info = pltpu.get_tpu_info()
        return int(getattr(info, "vmem_capacity_bytes", default))
    except Exception:
        return default


# ---------------------------------------------------------------------------
# Kernel: one (row-block i, contraction-block k) step of
#     out[i] += A_hat[i, k] @ y[k]          (f32 accumulation directly in out block)
# finalize (k == last):  out[i] = dinv[i] * out[i] + bias
# ---------------------------------------------------------------------------
def gcn_agg_kernel(adj_ref, y_ref, dinv_ref, b_ref, out_ref,
                   *, compute_dtype, y_resident, tile_k):
    k = pl.program_id(1)

    @pl.when(k == 0)
    def _init():
        out_ref[...] = jnp.zeros_like(out_ref)

    # int8/bf16 -> MXU input dtype; VALU slots are idle in this kernel, cast is free.
    a_tile = adj_ref[...].astype(compute_dtype)
    if y_resident:
        off = pl.multiple_of(k * tile_k, tile_k)
        y_tile = y_ref[pl.ds(off, tile_k), :]        # whole y is VMEM-resident
    else:
        y_tile = y_ref[...]                          # streamed (tile_k, Cp) block

    out_ref[...] += jnp.dot(a_tile, y_tile, preferred_element_type=jnp.float32)

    @pl.when(k == pl.num_programs(1) - 1)
    def _finalize():
        # Row scaling by dinv and bias add applied once, at finalize.
        out_ref[...] = dinv_ref[...] * out_ref[...] + b_ref[...]


class GCNCache(NamedTuple):
    adj: jax.Array        # (Np, Np) padded A_hat in storage dtype (self loops folded in)
    dinv: jax.Array       # (Np, 1) f32, zero on padded rows
    n: int
    cout: int
    cp: int
    n_pad: int
    tile_m: int
    tile_k: int
    y_resident: bool
    compute_dtype: object
    vmem_limit: int


def gcn_prepare(adj, out_channels, *, add_self_loops=False,
                adj_store_dtype=jnp.int8, mxu_bf16=True,
                tile_m=256, tile_k=2048):
    """One-time gcn_norm precompute (equivalent of the module's `cached_adj`).

    int8 (and bf16) adjacency storage is exact only for 0/1 / small-integer edge
    weights; pass adj_store_dtype=jnp.float32 for general weighted graphs.
    """
    n = adj.shape[0]
    a = adj.astype(jnp.float32)
    if add_self_loops:
        a = a + jnp.eye(n, dtype=jnp.float32)        # A_hat = A + I (as in gcn_norm)
    deg = jnp.sum(a, axis=1)
    dinv = jnp.where(deg > 0.0, jax.lax.rsqrt(deg), 0.0)

    compute_dtype = jnp.bfloat16 if mxu_bf16 else jnp.float32
    adj_itemsize = np.dtype(adj_store_dtype).itemsize
    y_itemsize = np.dtype(compute_dtype).itemsize

    cout = int(out_channels)
    cp = _round_up(max(cout, 1), 128)                # lane-dense output

    # ---- tile planning (trace-time Python only) -----------------------------
    nr = _round_up(n, 128)
    vmem_budget = int(_vmem_capacity_bytes() * 0.8)  # per-TC physical cap, with headroom

    tile_m = max(128, min((int(tile_m) // 128) * 128, nr))
    # Keep >=4 row blocks when the graph allows it (even 2-TensorCore split on v7x).
    while tile_m > 128 and _round_up(nr, tile_m) // tile_m < 4:
        tile_m = max(128, ((tile_m // 2) // 128) * 128)

    tile_k = max(tile_m, (min(int(tile_k), nr) // tile_m) * tile_m)   # multiple of tile_m

    def plan(tm, tk):
        np_ = _round_up(n, tk)
        y_total = 2 * np_ * cp * y_itemsize          # conservatively assume 2 buffers
        y_res = y_total <= vmem_budget // 2
        fp = (2 * tm * tk * adj_itemsize             # adjacency double-buffer
              + (y_total if y_res else 2 * tk * cp * y_itemsize)
              + 2 * tm * cp * 4                      # resident/double-buffered out block
              + 2 * (tm + cp) * 4)                   # dinv / bias
        return fp, np_, y_res

    fp, n_pad, y_resident = plan(tile_m, tile_k)
    while fp > vmem_budget and tile_k > tile_m:
        tile_k = max(tile_m, ((tile_k // 2) // tile_m) * tile_m)
        fp, n_pad, y_resident = plan(tile_m, tile_k)
    while fp > vmem_budget and tile_m > 128:
        tile_m = max(128, ((tile_m // 2) // 128) * 128)
        tile_k = max(tile_m, (tile_k // tile_m) * tile_m)
        fp, n_pad, y_resident = plan(tile_m, tile_k)

    vmem_limit = int(min(max(fp + (4 << 20), 32 << 20), vmem_budget))

    adj_p = jnp.pad(a, ((0, n_pad - n), (0, n_pad - n))).astype(adj_store_dtype)
    dinv_p = jnp.pad(dinv, (0, n_pad - n))[:, None]                  # (Np, 1) f32

    return GCNCache(adj=adj_p, dinv=dinv_p, n=n, cout=cout, cp=cp, n_pad=n_pad,
                    tile_m=tile_m, tile_k=tile_k, y_resident=y_resident,
                    compute_dtype=compute_dtype, vmem_limit=vmem_limit)


def gcn_conv_apply(cache: GCNCache, x, weight, bias):
    """Per-call work: x @ W, dinv scaling, and the tiled aggregation kernel."""
    n, cout, cp = cache.n, cache.cout, cache.cp
    n_pad, tile_m, tile_k = cache.n_pad, cache.tile_m, cache.tile_k
    cdt = cache.compute_dtype

    x = x.astype(jnp.float32)
    weight = weight.astype(jnp.float32)
    # O(N·Cin·Cout) precompute, negligible vs. the O(N²·Cout) aggregation.
    y = cache.dinv[:n] * jnp.dot(x, weight)                          # (N, Cout) f32
    y_p = jnp.pad(y, ((0, n_pad - n), (0, cp - cout))).astype(cdt)
    bias_p = jnp.pad(bias.astype(jnp.float32)[None, :], ((0, 0), (0, cp - cout)))

    n_row = n_pad // tile_m
    n_k = n_pad // tile_k

    if cache.y_resident:
        # Whole y DMA'd once (constant block index) and kept VMEM-resident.
        y_spec = pl.BlockSpec((n_pad, cp), lambda i, k: (0, 0))
    else:
        y_spec = pl.BlockSpec((tile_k, cp), lambda i, k: (k, 0))

    adj_itemsize = np.dtype(cache.adj.dtype).itemsize
    y_itemsize = np.dtype(cdt).itemsize
    cost = pl.CostEstimate(
        flops=2 * n_pad * n_pad * cp,
        transcendentals=0,
        bytes_accessed=(n_pad * n_pad * adj_itemsize
                        + (n_pad * cp * y_itemsize if cache.y_resident
                           else n_row * n_pad * cp * y_itemsize)
                        + n_pad * cp * 4 + n_pad * 4 + cp * 4),
    )

    out_p = pl.pallas_call(
        functools.partial(gcn_agg_kernel, compute_dtype=cdt,
                          y_resident=cache.y_resident, tile_k=tile_k),
        out_shape=jax.ShapeDtypeStruct((n_pad, cp), jnp.float32),
        grid_spec=pltpu.PrefetchScalarGridSpec(
            num_scalar_prefetch=0,
            grid=(n_row, n_k),                                        # (rows, contraction)
            in_specs=[
                pl.BlockSpec((tile_m, tile_k), lambda i, k: (i, k)),  # adjacency (int8)
                y_spec,                                               # y = dinv ⊙ xW
                pl.BlockSpec((tile_m, 1), lambda i, k: (i, 0)),       # dinv rows
                pl.BlockSpec((1, cp), lambda i, k: (0, 0)),           # bias
            ],
            out_specs=pl.BlockSpec((tile_m, cp), lambda i, k: (i, 0)),
        ),
        compiler_params=pltpu.CompilerParams(
            dimension_semantics=("parallel", "arbitrary"),
            vmem_limit_bytes=cache.vmem_limit),
        cost_estimate=cost,
    )(cache.adj, y_p, cache.dinv, bias_p)

    return out_p[:n, :cout]


def gcn_conv(x, adj, weight, bias, *, add_self_loops=False, **plan_kwargs):
    """Uncached convenience wrapper (prepare + apply in one call)."""
    cache = gcn_prepare(adj, weight.shape[1], add_self_loops=add_self_loops, **plan_kwargs)
    return gcn_conv_apply(cache, x, weight, bias)


def _reference(x, adj, weight, bias, add_self_loops=False):
    a = adj.astype(jnp.float32)
    if add_self_loops:
        a = a + jnp.eye(a.shape[0], dtype=jnp.float32)
    deg = a.sum(axis=1)
    dinv = jnp.where(deg > 0, deg ** -0.5, 0.0)
    a = a * dinv[:, None] * dinv[None, :]
    return a @ (x @ weight) + bias[None, :]


if __name__ == "__main__":
    # Small, deterministic problem: N=200 nodes (pads to 256 -> 2 row blocks of 128),
    # in_channels=8, out_channels=32 (padded to 128 lanes inside the kernel).
    N, C_IN, C_OUT = 200, 8, 32
    key = jax.random.PRNGKey(0)
    k_adj, k_x, k_w, k_b = jax.random.split(key, 4)

    # Random symmetric 0/1 adjacency, no self loops (module default add_self_loops=False).
    a_upper = (jax.random.uniform(k_adj, (N, N)) < 0.1).astype(jnp.float32)
    adj = jnp.triu(a_upper, k=1)
    adj = adj + adj.T

    x = jax.random.normal(k_x, (N, C_IN), dtype=jnp.float32)

    # Xavier-uniform weight init (deterministic); small random bias to exercise the bias path.
    bound = (6.0 / (C_IN + C_OUT)) ** 0.5
    weight = jax.random.uniform(k_w, (C_IN, C_OUT), minval=-bound, maxval=bound,
                                dtype=jnp.float32)
    bias = 0.1 * jax.random.normal(k_b, (C_OUT,), dtype=jnp.float32)

    for add_sl in (False, True):
        ref = _reference(x, adj, weight, bias, add_self_loops=add_sl)

        # f32 MXU parity path (int8 adjacency storage is exact for the 0/1 graph).
        cache_f32 = gcn_prepare(adj, C_OUT, add_self_loops=add_sl, mxu_bf16=False)
        out_f32 = jax.block_until_ready(gcn_conv_apply(cache_f32, x, weight, bias))
        assert out_f32.shape == (N, C_OUT)
        assert jnp.allclose(out_f32, ref, atol=1e-4, rtol=1e-4)

        # Default production path: int8 adjacency stream, bf16 MXU operands.
        cache_bf16 = gcn_prepare(adj, C_OUT, add_self_loops=add_sl, mxu_bf16=True)
        out_bf16 = jax.block_until_ready(gcn_conv_apply(cache_bf16, x, weight, bias))
        assert out_bf16.shape == (N, C_OUT)
        assert jnp.allclose(out_bf16, ref, atol=2e-2, rtol=2e-2)

        # Second call reusing the cache exercises the per-call fast path (no f32 adj reads).
        out2 = jax.block_until_ready(gcn_conv_apply(cache_bf16, x, weight, bias))
        assert jnp.allclose(out2, out_bf16)

    print("KERNEL_OK")
</pallas_src>

<mosaic_0001>
module attributes {stable_mosaic.version = 11 : i64} {
  func.func @gcn_agg_kernel(%arg0: i32, %arg1: i32, %arg2: memref<128x256xi8, #tpu.memory_space<vmem>>, %arg3: memref<256x128xf32, #tpu.memory_space<vmem>>, %arg4: memref<128x1xf32, #tpu.memory_space<vmem>>, %arg5: memref<1x128xf32, #tpu.memory_space<vmem>>, %arg6: memref<128x128xf32, #tpu.memory_space<vmem>>) attributes {dimension_semantics = [#tpu.dimension_semantics<parallel>, #tpu.dimension_semantics<arbitrary>], iteration_bounds = array<i64: 2, 1>, scalar_prefetch = 0 : i64, scratch_operands = 0 : i64, tpu.core_type = #tpu.core_type<tc>, window_params = [{transform_indices = @transform_0, window_bounds = array<i64: 128, 256>}, {pipeline_mode = #tpu.pipeline_mode<synchronous>, transform_indices = @transform_1, window_bounds = array<i64: 256, 128>}, {transform_indices = @transform_2, window_bounds = array<i64: 128, 1>}, {pipeline_mode = #tpu.pipeline_mode<synchronous>, transform_indices = @transform_3, window_bounds = array<i64: 1, 128>}, {transform_indices = @transform_4, window_bounds = array<i64: 128, 128>}]} {
    %c0_i32 = arith.constant 0 : i32
    %0 = arith.cmpi eq, %arg1, %c0_i32 : i32
    %1 = arith.extui %0 : i1 to i32
    %c0_i32_0 = arith.constant 0 : i32
    %2 = arith.cmpi ne, %1, %c0_i32_0 : i32
    scf.if %2 {
      %cst_9 = arith.constant 0.000000e+00 : f32
      %16 = vector.broadcast %cst_9 : f32 to vector<128x128xf32>
      %c0_10 = arith.constant 0 : index
      %c0_11 = arith.constant 0 : index
      %17 = vector.load %arg6[%c0_10, %c0_11] : memref<128x128xf32, #tpu.memory_space<vmem>>, vector<128x128xf32>
      tpu.vector_store %arg6[%c0_10, %c0_11], %16 {strides = array<i32>} : memref<128x128xf32, #tpu.memory_space<vmem>>, vector<128x128xf32>,
    } else {
    }
    %c0 = arith.constant 0 : index
    %c0_1 = arith.constant 0 : index
    %3 = vector.load %arg2[%c0, %c0_1] : memref<128x256xi8, #tpu.memory_space<vmem>>, vector<128x256xi8>
    %4 = arith.sitofp %3 : vector<128x256xi8> to vector<128x256xf32>
    %c256_i32 = arith.constant 256 : i32
    %5 = arith.muli %arg1, %c256_i32 : i32
    %6 = tpu.assume_multiple %5, 256 : i32
    %7 = arith.index_cast %6 : i32 to index
    %c0_2 = arith.constant 0 : index
    %8 = vector.load %arg3[%7, %c0_2] : memref<256x128xf32, #tpu.memory_space<vmem>>, vector<256x128xf32>
    %c0_3 = arith.constant 0 : index
    %c0_4 = arith.constant 0 : index
    %9 = vector.load %arg6[%c0_3, %c0_4] : memref<128x128xf32, #tpu.memory_space<vmem>>, vector<128x128xf32>
    %cst = arith.constant dense<0.000000e+00> : vector<128x128xf32>
    %10 = tpu.matmul %4, %8, %cst {dimension_numbers = #tpu.dot_dimension_numbers<[1], [0], [0], [1], [0, 0, 1, 1], [], []>} : vector<128x256xf32>, vector<256x128xf32>, vector<128x128xf32> -> vector<128x128xf32>
    %11 = arith.addf %9, %10 : vector<128x128xf32>
    %c0_5 = arith.constant 0 : index
    %c0_6 = arith.constant 0 : index
    %12 = vector.load %arg6[%c0_5, %c0_6] : memref<128x128xf32, #tpu.memory_space<vmem>>, vector<128x128xf32>
    tpu.vector_store %arg6[%c0_5, %c0_6], %11 {strides = array<i32>} : memref<128x128xf32, #tpu.memory_space<vmem>>, vector<128x128xf32>,
    %c0_i32_7 = arith.constant 0 : i32
    %13 = arith.cmpi eq, %arg1, %c0_i32_7 : i32
    %14 = arith.extui %13 : i1 to i32
    %c0_i32_8 = arith.constant 0 : i32
    %15 = arith.cmpi ne, %14, %c0_i32_8 : i32
    scf.if %15 {
      %c0_9 = arith.constant 0 : index
      %c0_10 = arith.constant 0 : index
      %16 = vector.load %arg4[%c0_9, %c0_10] : memref<128x1xf32, #tpu.memory_space<vmem>>, vector<128x1xf32>
      %c0_11 = arith.constant 0 : index
      %c0_12 = arith.constant 0 : index
      %17 = vector.load %arg6[%c0_11, %c0_12] : memref<128x128xf32, #tpu.memory_space<vmem>>, vector<128x128xf32>
      %18 = vector.broadcast %16 : vector<128x1xf32> to vector<128x128xf32>
      %19 = arith.mulf %18, %17 : vector<128x128xf32>
      %c0_13 = arith.constant 0 : index
      %c0_14 = arith.constant 0 : index
      %20 = vector.load %arg5[%c0_13, %c0_14] : memref<1x128xf32, #tpu.memory_space<vmem>>, vector<1x128xf32>
      %21 = vector.broadcast %20 : vector<1x128xf32> to vector<128x128xf32>
      %22 = arith.addf %19, %21 : vector<128x128xf32>
      %c0_15 = arith.constant 0 : index
      %c0_16 = arith.constant 0 : index
      %23 = vector.load %arg6[%c0_15, %c0_16] : memref<128x128xf32, #tpu.memory_space<vmem>>, vector<128x128xf32>
      tpu.vector_store %arg6[%c0_15, %c0_16], %22 {strides = array<i32>} : memref<128x128xf32, #tpu.memory_space<vmem>>, vector<128x128xf32>,
    } else {
    }
    return
  }
  func.func @transform_0(%arg0: i32, %arg1: i32) -> (i32, i32) {
    %c0_i32 = arith.constant 0 : i32
    return %arg0, %arg1 : i32, i32
  }
  func.func @transform_1(%arg0: i32, %arg1: i32) -> (i32, i32) {
    %c0_i32 = arith.constant 0 : i32
    %c0_i32_0 = arith.constant 0 : i32
    %c0_i32_1 = arith.constant 0 : i32
    return %c0_i32, %c0_i32_0 : i32, i32
  }
  func.func @transform_2(%arg0: i32, %arg1: i32) -> (i32, i32) {
    %c0_i32 = arith.constant 0 : i32
    %c0_i32_0 = arith.constant 0 : i32
    return %arg0, %c0_i32 : i32, i32
  }
  func.func @transform_3(%arg0: i32, %arg1: i32) -> (i32, i32) {
    %c0_i32 = arith.constant 0 : i32
    %c0_i32_0 = arith.constant 0 : i32
    %c0_i32_1 = arith.constant 0 : i32
    return %c0_i32, %c0_i32_0 : i32, i32
  }
  func.func @transform_4(%arg0: i32, %arg1: i32) -> (i32, i32) {
    %c0_i32 = arith.constant 0 : i32
    %c0_i32_0 = arith.constant 0 : i32
    return %arg0, %c0_i32 : i32, i32
  }
}

</mosaic_0001>

<bundles_post_ra>
// kernel: tpu_custom_call.1
= control target key start
LH: loop header
LB: loop body
LE: loop exit
PB: predicated region body
PF: predicated region fallthrough
CT: control target
= control target key end

     0   :  { %9 = vsyncpa [#allocation3], 0  ;;  %s1623_s0 = inlined_call_operand.hbm [shape: s8[256,256], index: 0, kind: input, shape index: {}]   ;;  %s1624_s1 = inlined_call_operand.vmem [shape: f32[256,128], index: 1, kind: input, shape index: {}]   ;;  %s1625_s2 = inlined_call_operand.vmem [shape: f32[256,1], index: 2, kind: input, shape index: {}]   ;;  %s1626_s3 = inlined_call_operand.vmem [shape: f32[1,128], index: 3, kind: input, shape index: {}]   ;;  %s1627_s4 = inlined_call_operand.hbm [shape: f32[256,128], index: 4, kind: output, shape index: {}]  }
   0x1   :  { %11 = vsyncpa [#allocation3 + $0x1], 0 }
   0x2   :  { %12 = vsyncpa [#allocation4], 0 }
   0x3   :  { %14 = vsyncpa [#allocation4 + $0x1], 0  ;;  %s1225_s15 = smov 0   ;;  %s1227_s16 = smov 0  }
   0x4   :  { %s1229_s17 = smov 0   ;;  %s1231_s18 = smov 0  }
   0x5   :  { %s1233_s19 = smov 0   ;;  %s1235_s20 = smov 0  }
   0x6 LB: > { %s859_s21 = sadd.s32 4294967295, %s1191_s20   ;;  %s860_s22 = sadd.s32 4294967294, %s1191_s20   ;;  %s1191_s20 = sphi %s1235_s20, %s20_s20   ;;  %s1187_s19 = sphi %s1233_s19, %s1643_s19   ;;  %s1183_s18 = sphi %s1231_s18, %s1642_s18   ;;  %s1179_s17 = sphi %s1229_s17, %s1641_s17   ;;  %s1175_s16 = sphi %s1227_s16, %s1640_s16   ;;  %s1171_s15 = sphi %s1225_s15, %s1639_s15  }
   0x7   : > { %s32_s23 = sadd.s32 1, %s1187_s19  ;;  %s41_s24 = sadd.s32 1, %s1179_s17 }
   0x8   : > { %p34_p0 = scmp.ge.s32.totalorder %s32_s23, 2  ;;  %p48_p1 = scmp.ne.s32.totalorder %s1179_s17, %s1175_s16 }
   0x9   : > { %p49_p2 = scmp.eq.s32.totalorder %s1191_s20, 0  ;;  %p54_p3 = scmp.ne.s32.totalorder %s1175_s16, %s1171_s15 }
   0xa   : > { %s1645_s23 = smov (%p34_p0, %s32_s23), 0  ;;  %p55_p5 = scmp.eq.s32.totalorder %s859_s21, 0 }
   0xb   : > { %p1266_p4 = por %p49_p2, %p48_p1  ;;  %s36_s26 = ssub.s32 %s1187_s19, %s1645_s23 }
   0xc   : > { %p146_p6 = scmp.eq.s32.totalorder %s859_s21, 1  ;;  %p39_p7 = scmp.eq.s32.totalorder %s36_s26, 0 }
   0xd   : > { %p1272_p8 = por %p55_p5, %p54_p3  ;;  %p152_p10 = scmp.eq.s32.totalorder %s860_s22, 1 }
   0xe   : > { %p1276_p9 = por %p146_p6, %p48_p1  ;;  %p1021_p13 = scmp.lt.s32.totalorder %s1191_s20, 2 }
   0xf   : > { %s1281_s29 = scalar_select %p39_p7, %s1179_s17, %s41_s24  }
  0x10   : > { %s1631_s28 = scalar_select %p1276_p9, 1, 0 }
  0x11   : > { %p1283_p11 = por %p152_p10, %p54_p3  ;;  %s178_s5 = sand.u32 1, %s1179_s17  }
  0x12   : > { %s863_s6 = sshll.u32 %s178_s5, 6  ;;  %s879_s7 = sshll.u32 %s1187_s19, 10 }
  0x13   : > { %s1632_s30 = scalar_select %p1283_p11, 1, 0 }
  0x14   : > { %s1294_s10 = scalar_lea.hbm %s1623_s0, %s879_s7  ;;  %s182_s11 = scalar_lea.vmem [#allocation2], %s863_s6 }
  0x15   : > { %s192_s12 = sshll.u32 %s182_s11, 4  ;;  %p1300_p0 = pnand %p1021_p13, %p1266_p4  ;;  %s1296_s12 = int_to_ptr.vmem [resolvable:$true] %s192_s12 }
  0x16   : > { %s1305_s14 = scalar_lea.sflag [#allocation3], %s178_s5  ;;  %s1079_s21 = scalar_lea.hbm %s1294_s10, 1024 }
  0x17   : > { %p1080_p2 = scmp.ne.s32.totalorder %s1294_s10, %s1079_s21  ;;  %p1081_p3 = pneg %p1300_p0 }
  0x18   : > { %s1084_s25 = scalar_lea.hbm %s1623_s0, 2048  ;;  %p1085_p4 = scmp.lt.u32.totalorder %s1294_s10, %s1623_s0 }
  0x19   : > { %p1082_p5 = pnand %p1081_p3, %p1080_p2  ;;  %p1086_p7 = scmp.lt.u32.totalorder %s1084_s25, %s1079_s21 }
  0x1a   : > { %p1088_p13 = scmp.lt.u32.totalorder %s1079_s21, %s1294_s10 }
  0x1b   : > { %p1083_p6 = pneg %p1082_p5  ;;  %p1087_p10 = por %p1086_p7, %p1085_p4 }
  0x1d   : > { %p1089_p12 = por %p1088_p13, %p1087_p10 }
  0x1f   : > { %p1090_p1 = pnand %p1089_p12, %p1083_p6 }
  0x21   : > { %1093 = shalt.err (!%p1090_p1)
}
  0x22   : > { %s1094_s5 = scalar_lea.vmem %s1296_s12, 1024  ;;  %s1193_s7 = smov [#allocation2]  }
  0x23   : > { %p1095_p2 = scmp.ne.s32.totalorder %s1296_s12, %s1094_s5  ;;  %s1099_s8 = sshll.u32 %s1193_s7, 4  ;;  %s1100_s8 = int_to_ptr.vmem [resolvable:$false] %s1099_s8 }
  0x24   : > { %s1101_s9 = scalar_lea.vmem %s1100_s8, 2048  ;;  %p1102_p9 = scmp.lt.s32.totalorder %s1296_s12, %s1100_s8 }
  0x25   : > { %p1097_p5 = pnand %p1095_p2, %p1081_p3  ;;  %p1103_p4 = scmp.lt.s32.totalorder %s1101_s9, %s1094_s5 }
  0x27   : > { %p1098_p11 = pneg %p1097_p5  ;;  %p1104_p7 = por %p1103_p4, %p1102_p9 }
  0x29   : > { %p1105_p10 = pnand %p1104_p7, %p1098_p11 }
  0x2b   : > { %1108 = shalt.err (!%p1105_p10)
}
  0x2c   : > { %s1194_s11 = smov 256   ;;  %s1195_s21 = smov 16  }
  0x2d   : > { %1016 = dma.hbm_to_vmem [thread:$0]  (!%p1300_p0), %s1294_s10, 1024, %s1296_s12, %s1305_s14, %s1194_s11, %s1194_s11, %s1195_s21  }
  0x2e   : > { %p209_p12 = scmp.lt.s32.totalorder %s1191_s20, 3  ;;  %p1634_p1 = scmp.ge.s32.totalorder %s1191_s20, 1 }
  0x30   : > { %p210_p3 = pnand %p1634_p1, %p209_p12 }
  0x31   : > { %s1337_s22 = sand.u32 (!%p210_p3), 1, %s1175_s16  }
  0x32   : > { %213 = sbr.rel (%p210_p3) target bundleno = 355 (0x163), region = 36  ;;  %s868_s24 = sshll.u32 (!%p210_p3), %s1337_s22, 6 }
  0x33   : > { %s216_s25 = scalar_lea.sflag (!%p210_p3), [#allocation3], %s1337_s22  ;;  %s1341_s26 = scalar_lea.vmem (!%p210_p3), [#allocation2], %s868_s24 }
  0x39   : > { %1162 = dma.done.wait (%p1272_p8), %s216_s25, 1024  }
  0x3a   : > { %1164 = vsyncadd (%p1272_p8), %s216_s25, 4294966272  ;;  %v1196_v0 = vmov 0   ;;  %s870_s10 = sshll.u32 %s1183_s18, 4  ;;  %v368_v1 = vld [vmem:[%s1624_s1 + $0x80] sm:$0xff]  ;;  %v369_v2 = vld [vmem:[%s1624_s1 + $0x88] sm:$0xff]  ;;  %s880_s7 = sshll.u32 %s1183_s18, 11 }
  0x3b   : > { %1078 = vset.pattern.permute.xlu1 %v1196_v0  ;;  %1077 = vset.pattern.permute.xlu0 %v1196_v0  ;;  %p1348_p9 = scmp.lt.s32.totalorder %s870_s10, 31  ;;  %v352_v3 = vld [vmem:[%s1624_s1] sm:$0xff]  ;;  %v961_v4 = vpack.c.bf16 %v369_v2, %v368_v1  ;;  %v353_v5 = vld [vmem:[%s1624_s1 + $0x8] sm:$0xff]  ;;  %v370_v6 = vld [vmem:[%s1624_s1 + $0x90] sm:$0xff]  ;;  %s1568_s21 = scalar_lea.hbm %s1627_s4, %s880_s7 }
  0x3c   : > { %v371_v7 = vld [vmem:[%s1624_s1 + $0x98] sm:$0xff]  ;;  %v963_v8 = vpack.c.bf16 %v353_v5, %v352_v3  ;;  %v354_v10 = vld [vmem:[%s1624_s1 + $0x10] sm:$0xff]  ;;  %v372_v12 = vld [vmem:[%s1624_s1 + $0xa0] sm:$0xff]  ;;  %s748_s18 = scalar_lea.sflag [#allocation4], %s1337_s22  ;;  %p1636_p11 = scmp.ne.s32.totalorder %s1631_s28, 0 }
  0x3d   : > { %v965_v9 = vpack.c.bf16 %v371_v7, %v370_v6  ;;  %v355_v11 = vld [vmem:[%s1624_s1 + $0x18] sm:$0xff]  ;;  %962 = vmatprep.subr.bf16.mxu0 %v961_v4  ;;  %993 = vmatprep.subr.bf16.mxu1 %v961_v4  ;;  %v373_v13 = vld [vmem:[%s1624_s1 + $0xa8] sm:$0xff]  ;;  %s1647_s10 = smov (!%p1348_p9, %s870_s10), 31  ;;  %v356_v16 = vld [vmem:[%s1624_s1 + $0x20] sm:$0xff] }
  0x3e   : > { %964 = vmatpush3.bf16.msra.mxu0 %v963_v8  ;;  %1001 = vmatpush3.bf16.msra.mxu1 %v963_v8  ;;  %v967_v14 = vpack.c.bf16 %v355_v11, %v354_v10  ;;  %v969_v15 = vpack.c.bf16 %v373_v13, %v372_v12  ;;  %v357_v17 = vld [vmem:[%s1624_s1 + $0x28] sm:$0xff]  ;;  %v374_v18 = vld [vmem:[%s1624_s1 + $0xb0] sm:$0xff]  ;;  %v375_v19 = vld [vmem:[%s1624_s1 + $0xb8] sm:$0xff]  ;;  %s871_s5 = sshll.u32 %s1647_s10, 3  ;;  %s1197_s10 = smov [#allocation5]  }
  0x3f   : > { %966 = vmatprep.subr.bf16.mxu0 %v965_v9  ;;  %994 = vmatprep.subr.bf16.mxu1 %v965_v9  ;;  %v971_v20 = vpack.c.bf16 %v357_v17, %v356_v16  ;;  %v973_v21 = vpack.c.bf16 %v375_v19, %v374_v18  ;;  %v358_v22 = vld [vmem:[%s1624_s1 + $0x30] sm:$0xff]  ;;  %v359_v23 = vld [vmem:[%s1624_s1 + $0x38] sm:$0xff]  ;;  %v376_v24 = vld [vmem:[%s1624_s1 + $0xc0] sm:$0xff]  ;;  %s1414_s14 = scalar_lea.vmem %s1625_s2, %s871_s5  ;;  %s1113_s25 = sshll.u32 %s1197_s10, 4  ;;  %s1114_s25 = int_to_ptr.vmem [resolvable:$false] %s1113_s25 }
  0x40   : > { %v377_v25 = vld [vmem:[%s1624_s1 + $0xc8] sm:$0xff]  ;;  %v975_v29 = vpack.c.bf16 %v359_v23, %v358_v22  ;;  %v360_v30 = vld [vmem:[%s1624_s1 + $0x40] sm:$0xff]  ;;  %v582_v35 = vld [vmem:[%s1414_s14 + $0x10] sm:$0xff]  ;;  %s1115_s13 = scalar_lea.vmem %s1114_s25, 4096 }
  0x41   : > { %v1409_v26 = vld [vmem:[%s1341_s26 + $0x8] sm:$0xff]  ;;  %v977_v32 = vpack.c.bf16 %v377_v25, %v376_v24  ;;  %v580_v36 = vld [vmem:[%s1414_s14] sm:$0xff]  ;;  %v378_v37 = vld [vmem:[%s1624_s1 + $0xd0] sm:$0xff]  ;;  %624 = vperm.xlu1 %1078, %v582_v35  }
  0x42   : > { %968 = vmatpush3.bf16.msra.mxu0 %v967_v14  ;;  %1002 = vmatpush3.bf16.msra.mxu1 %v967_v14  ;;  %v287_v27 = vunpack.c.0.s8 %v1409_v26  ;;  %v1418_v28 = vld [vmem:[%s1341_s26 + $0x28] sm:$0xff]  ;;  %v379_v38 = vld [vmem:[%s1624_s1 + $0xd8] sm:$0xff]  ;;  %v362_v44 = vld [vmem:[%s1624_s1 + $0x50] sm:$0xff]  ;;  %v289_v4 = vunpack.c.1.s8 %v1409_v26  ;;  %v291_v14 = vunpack.c.2.s8 %v1409_v26  ;;  %v293_v24 = vunpack.c.3.s8 %v1409_v26 }
  0x43   : > { %970 = vmatprep.subr.bf16.mxu0 %v969_v15  ;;  %995 = vmatprep.subr.bf16.mxu1 %v969_v15  ;;  %v303_v31 = vunpack.c.0.s8 %v1418_v28  ;;  %v361_v33 = vld [vmem:[%s1624_s1 + $0x48] sm:$0xff]  ;;  %v583_v40 = vld [vmem:[%s1414_s14 + $0x18] sm:$0xff]  ;;  %v981_v43 = vpack.c.bf16 %v379_v38, %v378_v37  ;;  %v380_v46 = vld [vmem:[%s1624_s1 + $0xe0] sm:$0xff]  ;;  %v305_v5 = vunpack.c.1.s8 %v1418_v28  ;;  %v307_v15 = vunpack.c.2.s8 %v1418_v28 }
  0x44   : > { %v319_v34 = vcvt.s32.f32 %v287_v27  ;;  %614 = vperm.xlu0 %1077, %v580_v36   ;;  %v979_v41 = vpack.c.bf16 %v361_v33, %v360_v30  ;;  %v581_v42 = vld [vmem:[%s1414_s14 + $0x8] sm:$0xff]  ;;  %v363_v45 = vld [vmem:[%s1624_s1 + $0x58] sm:$0xff]  ;;  %v584_v50 = vld [vmem:[%s1414_s14 + $0x20] sm:$0xff]  ;;  %v321_v12 = vcvt.s32.f32 %v289_v4  ;;  %v323_v22 = vcvt.s32.f32 %v291_v14 }
  0x45   : > { %v335_v39 = vcvt.s32.f32 %v303_v31  ;;  %v381_v47 = vld [vmem:[%s1624_s1 + $0xe8] sm:$0xff]  ;;  %629 = vperm.xlu1 %1078, %v583_v40   ;;  %v983_v49 = vpack.c.bf16 %v363_v45, %v362_v44  ;;  %v364_v52 = vld [vmem:[%s1624_s1 + $0x60] sm:$0xff]  ;;  %v382_v54 = vld [vmem:[%s1624_s1 + $0xf0] sm:$0xff]  ;;  %v337_v13 = vcvt.s32.f32 %v305_v5  ;;  %v339_v23 = vcvt.s32.f32 %v307_v15 }
  0x46   : > { %972 = vmatpush3.bf16.msra.mxu0 %v971_v20  ;;  %1003 = vmatpush3.bf16.msra.mxu1 %v971_v20  ;;  %v585_v48 = vld [vmem:[%s1414_s14 + $0x28] sm:$0xff]  ;;  %v985_v51 = vpack.c.bf16 %v381_v47, %v380_v46  ;;  %v383_v55 = vld [vmem:[%s1624_s1 + $0xf8] sm:$0xff]  ;;  %v1465_v58 = vld [vmem:[%s1341_s26] sm:$0xff]  ;;  %v309_v25 = vunpack.c.3.s8 %v1418_v28  ;;  %v325_v28 = vcvt.s32.f32 %v293_v24 }
  0x47   : > { %974 = vmatprep.subr.bf16.mxu0 %v973_v21  ;;  %996 = vmatprep.subr.bf16.mxu1 %v973_v21  ;;  %v365_v53 = vld [vmem:[%s1624_s1 + $0x68] sm:$0xff]  ;;  %v587_v56 = vld [vmem:[%s1414_s14 + $0x38] sm:$0xff]  ;;  %v1468_v59 = vld [vmem:[%s1341_s26 + $0x20] sm:$0xff]  ;;  %v989_v61 = vpack.c.bf16 %v383_v55, %v382_v54  ;;  %v286_v0 = vunpack.c.0.s8 %v1465_v58  ;;  %v288_v9 = vunpack.c.1.s8 %v1465_v58  ;;  %v290_v19 = vunpack.c.2.s8 %v1465_v58 }
  0x48   : > { %464 = vmatprep.mubr.f32.mxu0 %v319_v34  ;;  %504 = vmatprep.mubr.f32.mxu1 %v335_v39  ;;  %v987_v57 = vpack.c.bf16 %v365_v53, %v364_v52  ;;  %v586_v60 = vld [vmem:[%s1414_s14 + $0x30] sm:$0xff]  ;;  %v367_v63 = vld [vmem:[%s1624_s1 + $0x78] sm:$0xff]  ;;  %v302_v1 = vunpack.c.0.s8 %v1468_v59  ;;  %v589_v2 = vld [vmem:[%s1414_s14 + $0x48] sm:$0xff]  ;;  %v304_v10 = vunpack.c.1.s8 %v1468_v59  ;;  %v306_v20 = vunpack.c.2.s8 %v1468_v59 }
  0x49   : > { %619 = vperm.xlu0 %1077, %v581_v42   ;;  %639 = vperm.xlu1 %1078, %v585_v48   ;;  %v366_v62 = vld [vmem:[%s1624_s1 + $0x70] sm:$0xff]  ;;  %v588_v6 = vld [vmem:[%s1414_s14 + $0x40] sm:$0xff]  ;;  %v318_v7 = vcvt.s32.f32 %v286_v0  ;;  %v591_v11 = vld [vmem:[%s1414_s14 + $0x58] sm:$0xff]  ;;  %v320_v17 = vcvt.s32.f32 %v288_v9  ;;  %v322_v31 = vcvt.s32.f32 %v290_v19  ;;  %v292_v33 = vunpack.c.3.s8 %v1465_v58 }
  0x4a   : > { %976 = vmatpush3.bf16.msra.mxu0 %v975_v29  ;;  %1004 = vmatpush3.bf16.msra.mxu1 %v975_v29  ;;  %v991_v3 = vpack.c.bf16 %v367_v63, %v366_v62  ;;  %v334_v8 = vcvt.s32.f32 %v302_v1  ;;  %v590_v16 = vld [vmem:[%s1414_s14 + $0x50] sm:$0xff]  ;;  %v336_v18 = vcvt.s32.f32 %v304_v10  ;;  %v593_v21 = vld [vmem:[%s1414_s14 + $0x68] sm:$0xff]  ;;  %v1495_v27 = vld [vmem:[%s1341_s26 + $0x18] sm:$0xff]  ;;  %v308_v26 = vunpack.c.3.s8 %v1468_v59 }
  0x4b   : > { %978 = vmatprep.subr.bf16.mxu0 %v977_v32  ;;  %997 = vmatprep.subr.bf16.mxu1 %v977_v32  ;;  %v1498_v29 = vld [vmem:[%s1341_s26 + $0x38] sm:$0xff]  ;;  %v592_v30 = vld [vmem:[%s1414_s14 + $0x60] sm:$0xff]  ;;  %v338_v32 = vcvt.s32.f32 %v306_v20  ;;  %v341_v35 = vcvt.s32.f32 %v309_v25  ;;  %v295_v36 = vunpack.c.0.s8 %v1495_v27  ;;  %v280_v38 = vld [vmem:[%s1341_s26 + $0x10] sm:$0xff]  ;;  %v297_v47 = vunpack.c.1.s8 %v1495_v27 }
  0x4c   : > { %v595_v34 = vld [vmem:[%s1414_s14 + $0x78] sm:$0xff]  ;;  %v311_v37 = vunpack.c.0.s8 %v1498_v29  ;;  %v284_v39 = vld [vmem:[%s1341_s26 + $0x30] sm:$0xff]  ;;  %v340_v42 = vcvt.s32.f32 %v308_v26  ;;  %v313_v48 = vunpack.c.1.s8 %v1498_v29  ;;  %v299_v55 = vunpack.c.2.s8 %v1495_v27  ;;  %s869_s26 = sshll.u32 %s1337_s22, 7 }
  0x4d   : > { %634 = vperm.xlu0 %1077, %v584_v50   ;;  %649 = vperm.xlu1 %1078, %v587_v56   ;;  %v594_v40 = vld [vmem:[%s1414_s14 + $0x70] sm:$0xff]  ;;  %v310_v44 = vunpack.c.0.s8 %v284_v39  ;;  %v327_v45 = vcvt.s32.f32 %v295_v36  ;;  %v312_v52 = vunpack.c.1.s8 %v284_v39  ;;  %v329_v53 = vcvt.s32.f32 %v297_v47  ;;  %s1531_s27 = scalar_lea.vmem [#allocation5], %s869_s26 }
  0x4e   : > { %980 = vmatpush3.bf16.msra.mxu0 %v979_v41  ;;  %1005 = vmatpush3.bf16.msra.mxu1 %v979_v41  ;;  %v324_v41 = vcvt.s32.f32 %v292_v33  ;;  %v343_v46 = vcvt.s32.f32 %v311_v37  ;;  %v345_v54 = vcvt.s32.f32 %v313_v48  ;;  %v315_v56 = vunpack.c.2.s8 %v1498_v29  ;;  %s761_s8 = sshll.u32 %s1531_s27, 4  ;;  %s1570_s8 = int_to_ptr.vmem [resolvable:$true] %s761_s8 }
  0x4f   : > { %982 = vmatprep.subr.bf16.mxu0 %v981_v43  ;;  %998 = vmatprep.subr.bf16.mxu1 %v981_v43  ;;  %v294_v43 = vunpack.c.0.s8 %v280_v38  ;;  %v342_v50 = vcvt.s32.f32 %v310_v44  ;;  %v344_v58 = vcvt.s32.f32 %v312_v52  ;;  %v298_v59 = vunpack.c.2.s8 %v280_v38  ;;  %s1109_s24 = scalar_lea.vmem %s1570_s8, 2048  ;;  %p1116_p13 = scmp.lt.s32.totalorder %s1570_s8, %s1114_s25 }
  0x50   : > { %v347_v62 = vcvt.s32.f32 %v315_v56  ;;  %v301_v63 = vunpack.c.3.s8 %v1495_v27  ;;  %v317_v0 = vunpack.c.3.s8 %v1498_v29  ;;  %v316_v4 = vunpack.c.3.s8 %v284_v39  ;;  %v1527_v27 = vld [vmem:[%s1626_s3] ss:$0 sm:$0xff]  ;;  %p1110_p8 = scmp.ne.s32.totalorder %s1570_s8, %s1109_s24  ;;  %p1117_p2 = scmp.lt.s32.totalorder %s1115_s13, %s1109_s24 }
  0x51   : > { %644 = vperm.xlu0 %1077, %v586_v60   ;;  %659 = vperm.xlu1 %1078, %v589_v2   ;;  %v314_v60 = vunpack.c.2.s8 %v284_v39  ;;  %v330_v1 = vcvt.s32.f32 %v298_v59 }
  0x52   : > { %984 = vmatpush3.bf16.msra.mxu0 %v983_v49  ;;  %1006 = vmatpush3.bf16.msra.mxu1 %v983_v49  ;;  %v326_v49 = vcvt.s32.f32 %v294_v43  ;;  %v333_v5 = vcvt.s32.f32 %v301_v63  ;;  %p1111_p0 = pnand %p1110_p8, %p1636_p11  ;;  %p1118_p5 = por %p1117_p2, %p1116_p13 }
  0x53   : > { %986 = vmatprep.subr.bf16.mxu0 %v985_v51  ;;  %999 = vmatprep.subr.bf16.mxu1 %v985_v51  ;;  %v296_v51 = vunpack.c.1.s8 %v280_v38  ;;  %v346_v2 = vcvt.s32.f32 %v314_v60 }
  0x54   : > { %p1112_p6 = pneg %p1111_p0 }
  0x55   : > { %654 = vperm.xlu0 %1077, %v588_v6   ;;  %669 = vperm.xlu1 %1078, %v591_v11   ;;  %v349_v6 = vcvt.s32.f32 %v317_v0 }
  0x56   : > { %988 = vmatpush3.bf16.msra.mxu0 %v987_v57  ;;  %1007 = vmatpush3.bf16.msra.mxu1 %v987_v57  ;;  %v328_v57 = vcvt.s32.f32 %v296_v51  ;;  %p1119_p4 = pnand %p1118_p5, %p1112_p6 }
  0x57   : > { %990 = vmatprep.subr.bf16.mxu0 %v989_v61  ;;  %1000 = vmatprep.subr.bf16.mxu1 %v989_v61  ;;  %v331_v61 = vcvt.s32.f32 %v299_v55 }
  0x59   : > { %664 = vperm.xlu0 %1077, %v590_v16   ;;  %679 = vperm.xlu1 %1078, %v593_v21  }
  0x5a   : > { %992 = vmatpush3.bf16.msra.mxu0 %v991_v3  ;;  %1008 = vmatpush3.bf16.msra.mxu1 %v991_v3  ;;  %v300_v3 = vunpack.c.3.s8 %v280_v38 }
  0x5d   : > { %465 = vmatmul.mubr.f32.vlgmr.msra.gmra.mrb[0].mxu0 %v318_v7  ;;  %505 = vmatmul.mubr.f32.vlgmr.msra.gmra.mrb[0].mxu1 %v334_v8  ;;  %v332_v7 = vcvt.s32.f32 %v300_v3  ;;  %v348_v8 = vcvt.s32.f32 %v316_v4 }
  0x5e   : > { %469 = vmatprep.mubr.f32.mxu0 %v321_v12  ;;  %509 = vmatprep.mubr.f32.mxu1 %v337_v13 }
  0x5f   : > { %674 = vperm.xlu0 %1077, %v592_v30   ;;  %689 = vperm.xlu1 %1078, %v595_v34  }
  0x61   : > { %470 = vmatmul.mubr.f32.gmra.mrb[2].mxu0 %v320_v17  ;;  %510 = vmatmul.mubr.f32.gmra.mrb[2].mxu1 %v336_v18 }
  0x62   : > { %474 = vmatprep.mubr.f32.mxu0 %v323_v22  ;;  %514 = vmatprep.mubr.f32.mxu1 %v339_v23 }
  0x63   : > { %684 = vperm.xlu0 %1077, %v594_v40  }
  0x65   : > { %475 = vmatmul.mubr.f32.gmra.mrb[4].mxu0 %v322_v31  ;;  %515 = vmatmul.mubr.f32.gmra.mrb[4].mxu1 %v338_v32 }
  0x66   : > { %479 = vmatprep.mubr.f32.mxu0 %v325_v28  ;;  %519 = vmatprep.mubr.f32.mxu1 %v341_v35 }
  0x69   : > { %480 = vmatmul.mubr.f32.gmra.mrb[6].mxu0 %v324_v41  ;;  %520 = vmatmul.mubr.f32.gmra.mrb[6].mxu1 %v340_v42 }
  0x6a   : > { %484 = vmatprep.mubr.f32.mxu0 %v327_v45  ;;  %524 = vmatprep.mubr.f32.mxu1 %v343_v46 }
  0x6d   : > { %485 = vmatmul.mubr.f32.gmra.mrb[8].mxu0 %v326_v49  ;;  %525 = vmatmul.mubr.f32.gmra.mrb[8].mxu1 %v342_v50 }
  0x6e   : > { %489 = vmatprep.mubr.f32.mxu0 %v329_v53  ;;  %529 = vmatprep.mubr.f32.mxu1 %v345_v54 }
  0x71   : > { %490 = vmatmul.mubr.f32.gmra.mrb[10].mxu0 %v328_v57  ;;  %530 = vmatmul.mubr.f32.gmra.mrb[10].mxu1 %v344_v58 }
  0x72   : > { %494 = vmatprep.mubr.f32.mxu0 %v331_v61  ;;  %534 = vmatprep.mubr.f32.mxu1 %v347_v62 }
  0x75   : > { %495 = vmatmul.mubr.f32.gmra.mrb[12].mxu0 %v330_v1  ;;  %535 = vmatmul.mubr.f32.gmra.mrb[12].mxu1 %v346_v2 }
  0x76   : > { %499 = vmatprep.mubr.f32.mxu0 %v333_v5  ;;  %539 = vmatprep.mubr.f32.mxu1 %v349_v6 }
  0x79   : > { %500 = vmatmul.mubr.f32.gmra.mrb[14].mxu0 %v332_v7  ;;  %540 = vmatmul.mubr.f32.gmra.mrb[14].mxu1 %v348_v8 }
  0xc0   : > { %v625_v10 = vpop.permute.xlu1 %624 }
  0xc3   : > { %v615_v9 = vpop.permute.xlu0 %614 }
  0xc4   : > { %v630_v12 = vpop.permute.xlu1 %629 }
  0xc8   : > { %v620_v11 = vpop.permute.xlu0 %619  ;;  %v1517_v14 = vpop.permute.xlu1 %639 }
  0xcc   : > { %v1515_v13 = vpop.permute.xlu0 %634  ;;  %v1521_v16 = vpop.permute.xlu1 %649 }
  0xd0   : > { %v1519_v15 = vpop.permute.xlu0 %644  ;;  %v660_v34 = vpop.permute.xlu1 %659 }
  0xd4   : > { %v655_v23 = vpop.permute.xlu0 %654  ;;  %v670_v55 = vpop.permute.xlu1 %669 }
  0xd8   : > { %v665_v44 = vpop.permute.xlu0 %664 }
  0xde   : > { %v675_v2 = vpop.permute.xlu0 %674 }
 0x130   : > { %v913_v17 = vpop.f32.mrb[0].mxu0  ;;  %v937_v18 = vpop.f32.mrb[0].mxu1 }
 0x131   : > { %v914_v19 = vpop.f32.mrb[1].mxu0  ;;  %v938_v20 = vpop.f32.mrb[1].mxu1 }
 0x132   : > { %v915_v21 = vadd.f32 %v914_v19, %v913_v17  ;;  %v939_v22 = vadd.f32 %v938_v20, %v937_v18  ;;  %v680_v17 = vpop.permute.xlu1 %679 }
 0x134   : > { %v916_v24 = vpop.f32.mrb[2].mxu0  ;;  %v940_v25 = vpop.f32.mrb[2].mxu1  ;;  %v692_v31 = vmul.f32 %v915_v21, %v615_v9  ;;  %v700_v32 = vmul.f32 %v939_v22, %v655_v23 }
 0x135   : > { %v917_v29 = vpop.f32.mrb[3].mxu0  ;;  %v941_v30 = vpop.f32.mrb[3].mxu1 }
 0x136   : > { %v918_v33 = vadd.f32 %v917_v29, %v916_v24  ;;  %v942_v26 = vadd.f32 %v941_v30, %v940_v25  ;;  %v715_v28 = vadd.f32 %v1527_v27, %v692_v31  ;;  %v723_v35 = vadd.f32 %v1527_v27, %v700_v32  ;;  %v685_v30 = vpop.permute.xlu0 %684 }
 0x138   : > { %v919_v36 = vpop.f32.mrb[4].mxu0  ;;  %v943_v37 = vpop.f32.mrb[4].mxu1  ;;  %731 = vst [vmem:[%s1531_s27] sm:$0xff] %v715_v28  ;;  %739 = vst [vmem:[%s1531_s27 + $0x40] sm:$0xff] %v723_v35  ;;  %v693_v40 = vmul.f32 %v918_v33, %v620_v11  ;;  %v701_v41 = vmul.f32 %v942_v26, %v660_v34 }
 0x139   : > { %v920_v38 = vpop.f32.mrb[5].mxu0  ;;  %v944_v39 = vpop.f32.mrb[5].mxu1 }
 0x13a   : > { %v921_v42 = vadd.f32 %v920_v38, %v919_v36  ;;  %v945_v43 = vadd.f32 %v944_v39, %v943_v37  ;;  %v716_v45 = vadd.f32 %v1527_v27, %v693_v40  ;;  %v724_v46 = vadd.f32 %v1527_v27, %v701_v41  ;;  %v690_v40 = vpop.permute.xlu1 %689 }
 0x13c   : > { %v922_v47 = vpop.f32.mrb[6].mxu0  ;;  %v946_v48 = vpop.f32.mrb[6].mxu1  ;;  %732 = vst [vmem:[%s1531_s27 + $0x8] sm:$0xff] %v716_v45  ;;  %740 = vst [vmem:[%s1531_s27 + $0x48] sm:$0xff] %v724_v46  ;;  %v694_v51 = vmul.f32 %v921_v42, %v625_v10  ;;  %v702_v52 = vmul.f32 %v945_v43, %v665_v44 }
 0x13d   : > { %v923_v49 = vpop.f32.mrb[7].mxu0  ;;  %v947_v50 = vpop.f32.mrb[7].mxu1 }
 0x13e   : > { %v924_v53 = vadd.f32 %v923_v49, %v922_v47  ;;  %v948_v54 = vadd.f32 %v947_v50, %v946_v48  ;;  %v717_v56 = vadd.f32 %v1527_v27, %v694_v51  ;;  %v725_v57 = vadd.f32 %v1527_v27, %v702_v52 }
 0x140   : > { %v925_v58 = vpop.f32.mrb[8].mxu0  ;;  %v949_v59 = vpop.f32.mrb[8].mxu1  ;;  %733 = vst [vmem:[%s1531_s27 + $0x10] sm:$0xff] %v717_v56  ;;  %741 = vst [vmem:[%s1531_s27 + $0x50] sm:$0xff] %v725_v57  ;;  %v695_v62 = vmul.f32 %v924_v53, %v630_v12  ;;  %v703_v63 = vmul.f32 %v948_v54, %v670_v55 }
 0x141   : > { %v926_v60 = vpop.f32.mrb[9].mxu0  ;;  %v950_v61 = vpop.f32.mrb[9].mxu1 }
 0x142   : > { %v927_v0 = vadd.f32 %v926_v60, %v925_v58  ;;  %v951_v1 = vadd.f32 %v950_v61, %v949_v59  ;;  %v718_v3 = vadd.f32 %v1527_v27, %v695_v62  ;;  %v726_v4 = vadd.f32 %v1527_v27, %v703_v63 }
 0x144   : > { %v928_v5 = vpop.f32.mrb[10].mxu0  ;;  %v952_v6 = vpop.f32.mrb[10].mxu1  ;;  %734 = vst [vmem:[%s1531_s27 + $0x18] sm:$0xff] %v718_v3  ;;  %742 = vst [vmem:[%s1531_s27 + $0x58] sm:$0xff] %v726_v4  ;;  %v696_v9 = vmul.f32 %v927_v0, %v1515_v13  ;;  %v704_v10 = vmul.f32 %v951_v1, %v675_v2 }
 0x145   : > { %v929_v7 = vpop.f32.mrb[11].mxu0  ;;  %v953_v8 = vpop.f32.mrb[11].mxu1 }
 0x146   : > { %v930_v11 = vadd.f32 %v929_v7, %v928_v5  ;;  %v954_v12 = vadd.f32 %v953_v8, %v952_v6  ;;  %v719_v18 = vadd.f32 %v1527_v27, %v696_v9  ;;  %v727_v19 = vadd.f32 %v1527_v27, %v704_v10 }
 0x148   : > { %v931_v20 = vpop.f32.mrb[12].mxu0  ;;  %v955_v21 = vpop.f32.mrb[12].mxu1  ;;  %735 = vst [vmem:[%s1531_s27 + $0x20] sm:$0xff] %v719_v18  ;;  %743 = vst [vmem:[%s1531_s27 + $0x60] sm:$0xff] %v727_v19  ;;  %v697_v24 = vmul.f32 %v930_v11, %v1517_v14  ;;  %v705_v25 = vmul.f32 %v954_v12, %v680_v17 }
 0x149   : > { %v932_v22 = vpop.f32.mrb[13].mxu0  ;;  %v956_v23 = vpop.f32.mrb[13].mxu1 }
 0x14a   : > { %v933_v13 = vadd.f32 %v932_v22, %v931_v20  ;;  %v957_v29 = vadd.f32 %v956_v23, %v955_v21  ;;  %v720_v31 = vadd.f32 %v1527_v27, %v697_v24  ;;  %v728_v32 = vadd.f32 %v1527_v27, %v705_v25 }
 0x14c   : > { %v934_v33 = vpop.f32.mrb[14].mxu0  ;;  %v958_v26 = vpop.f32.mrb[14].mxu1  ;;  %736 = vst [vmem:[%s1531_s27 + $0x28] sm:$0xff] %v720_v31  ;;  %744 = vst [vmem:[%s1531_s27 + $0x68] sm:$0xff] %v728_v32  ;;  %v698_v14 = vmul.f32 %v933_v13, %v1519_v15  ;;  %v706_v35 = vmul.f32 %v957_v29, %v685_v30 }
 0x14d   : > { %v935_v34 = vpop.f32.mrb[15].mxu0  ;;  %v959_v28 = vpop.f32.mrb[15].mxu1 }
 0x14e   : > { %v936_v36 = vadd.f32 %v935_v34, %v934_v33  ;;  %v960_v37 = vadd.f32 %v959_v28, %v958_v26  ;;  %v721_v38 = vadd.f32 %v1527_v27, %v698_v14  ;;  %v729_v39 = vadd.f32 %v1527_v27, %v706_v35 }
 0x150   : > { %737 = vst [vmem:[%s1531_s27 + $0x30] sm:$0xff] %v721_v38  ;;  %745 = vst [vmem:[%s1531_s27 + $0x70] sm:$0xff] %v729_v39  ;;  %v699_v41 = vmul.f32 %v936_v36, %v1521_v16  ;;  %v707_v42 = vmul.f32 %v960_v37, %v690_v40 }
 0x152   : > { %v722_v15 = vadd.f32 %v1527_v27, %v699_v41  ;;  %v730_v43 = vadd.f32 %v1527_v27, %v707_v42 }
 0x154   : > { %738 = vst [vmem:[%s1531_s27 + $0x38] sm:$0xff] %v722_v15  ;;  %746 = vst [vmem:[%s1531_s27 + $0x78] sm:$0xff] %v730_v43 }
 0x155   : > { %1122 = shalt.err (!%p1119_p4)
}
 0x156   : > { %s1123_s12 = scalar_lea.hbm %s1568_s21, 2048  ;;  %s1127_s14 = scalar_lea.hbm %s1627_s4, 4096 }
 0x157   : > { %p1124_p7 = scmp.ne.s32.totalorder %s1568_s21, %s1123_s12  ;;  %p1128_p1 = scmp.lt.u32.totalorder %s1568_s21, %s1627_s4 }
 0x158   : > { %p1129_p3 = scmp.lt.u32.totalorder %s1127_s14, %s1123_s12  ;;  %p1131_p8 = scmp.lt.u32.totalorder %s1123_s12, %s1568_s21 }
 0x159   : > { %p1125_p10 = pnand %p1124_p7, %p1636_p11 }
 0x15a   : > { %p1130_p9 = por %p1129_p3, %p1128_p1 }
 0x15b   : > { %p1126_p12 = pneg %p1125_p10 }
 0x15c   : > { %p1132_p0 = por %p1131_p8, %p1130_p9 }
 0x15e   : > { %p1133_p6 = pnand %p1132_p0, %p1126_p12 }
 0x160   : > { %1136 = shalt.err (!%p1133_p6)
}
 0x161   : > { %s1198_s7 = smov 128   ;;  %s1199_s9 = smov 8  }
 0x162   : > { %1011 = dma.vmem_to_hbm [thread:$0]  (%p1636_p11), %s1570_s8, 2048, %s1568_s21, %s748_s18, %s1198_s7, %s1198_s7, %s1199_s9  }
 0x163 PF: > { %s776_s11 = sand.u32 1, %s1171_s15   ;;  %p1637_p13 = scmp.ne.s32.totalorder %s1632_s30, 0 }
 0x164   : > { %p1638_p2 = scmp.ge.s32.totalorder %s1191_s20, 2  ;;  %s777_s24 = scalar_lea.sflag [#allocation4], %s776_s11 }
 0x166   : > { %p1018_p5 = pnand %p1638_p2, %p1637_p13 }
 0x168   : > { %1166 = dma.done.wait (!%p1018_p5), %s777_s24, 2048  }
 0x169   : > { %1168 = vsyncadd (!%p1018_p5), %s777_s24, 4294965248  ;;  %s20_s20 = sadd.s32 1, %s1191_s20   ;;  %s1639_s15 = smov %s1175_s16 }
 0x16a   : > { %p17_p4 = scmp.ge.s32.totalorder %s20_s20, 4   ;;  %s1640_s16 = smov %s1179_s17 }
 0x16b   : > { %s1641_s17 = smov %s1281_s29  ;;  %s1642_s18 = smov %s1187_s19 }
 0x16c   : > { %s1643_s19 = smov %s1645_s23  ;;  %19 = sbr.rel (!%p17_p4) target bundleno = 6 (0x6), region = 93 }
 0x173   :  { %782 = vsyncpa [#allocation3], 1 }
 0x174   :  { %784 = vsyncpa [#allocation3 + $0x1], 1 }
 0x175   :  { %785 = vsyncpa [#allocation4], 1 }
 0x176   :  { %787 = vsyncpa [#allocation4 + $0x1], 1 }

</bundles_post_ra>
